<compile_context>
chip_gen: v6e
topology: v6e:2x2x1
jax: 0.10.0
libtpu: 0.0.40
codegen_flags: <defaults>
</compile_context>

<pallas_src>
import functools

import jax
import jax.numpy as jnp
from jax import lax
from jax.experimental import pallas as pl
from jax.experimental.pallas import tpu as pltpu

# ----- module hyper-parameters (chosen so the residual shapes line up, which
#       the PyTorch module implicitly requires: stride=1, 2*pad_h=dil_h*(kh-1),
#       pad_w=dil_w*(kw-1)) -----
NUM_CHANNELS = (4, 8)      # (C0, C1)
KERNEL_SIZE = (3, 3)       # (KH, KW)
STRIDE = (1, 1)
PADDING = (1, 4)           # (PH, PW) ; PW columns are cropped off at the end
DILATION = (1, 2)          # (DH, DW)
BN_EPS = 1e-5


def _num_tensorcores():
    """Best-effort TensorCore count per JAX device (perf heuristic only)."""
    try:
        kind = jax.devices()[0].device_kind.lower()
    except Exception:
        return 1
    return 2 if any(tag in kind for tag in ("v7", "v4", "v5p")) else 1


def _pick_batch_block(batch, n_tc, max_block=32):
    """Images per grid step: one step on single-TC chips (saves ~0.35us/step of
    pipeline overhead), >= n_tc steps where a second TensorCore exists, and
    capped at max_block images/step to bound VMEM on v7x (64 MiB physical)."""
    min_steps = min(batch, max(n_tc, -(-batch // max_block)))
    best = 1
    for bb in range(1, batch + 1):
        if batch % bb == 0 and batch // bb >= min_steps:
            best = bb
    return best


def dilated_block_kernel(alpha_ref, x_ref, wdm_ref, w12_ref, out_ref, *, shifts):
    """One (Bb, C, H*W) block per grid step.

    Channels sit on sublanes, H*W on lanes (every load/store is full-lane).
    Pointwise convs are unrolled VPU broadcast-FMAs.  The depthwise dilated
    conv is 9 static lane rolls (XLU) times pre-masked, BN1-folded weights;
    only the first W output columns (== the PyTorch crop [..., :-PW]) exist."""
    Bb, C0, S = x_ref.shape
    n_taps = wdm_ref.shape[0] - 1
    C1 = wdm_ref.shape[1]
    assert len(shifts) == n_taps

    a1 = alpha_ref[0, 0]          # PReLU slopes (SMEM scalars)
    a2 = alpha_ref[0, 1]

    x = x_ref[...].astype(jnp.float32)          # (Bb, C0, S)
    w12 = w12_ref[...]                          # (C0+C1+1, Cm, 1) packed weights

    # ---- 1x1 conv C0 -> C1 (VPU broadcast-FMA) + PReLU ----
    # (BN1 is folded into the depthwise taps below, so no BN math here.)
    y = x[:, 0:1, :] * w12[0, :C1][None]
    for c0 in range(1, C0):
        y = y + x[:, c0:c0 + 1, :] * w12[c0, :C1][None]
    y = jnp.where(y > 0, y, a1 * y)

    # ---- depthwise dilated conv on the flat (H*W) lane axis ----
    # Each tap is a static roll (rolled[s] = y[s + delta]) times a per-lane
    # masked weight (mask zeros the lanes where the roll wraps across rows or
    # outside the image == the conv's zero padding).  Two accumulators keep
    # ILP up at small batch blocks.
    acc_a = None
    acc_b = None
    for t in range(n_taps):
        sh = shifts[t]
        yt = y if sh == 0 else pltpu.roll(y, shift=sh, axis=2)
        term = yt * wdm_ref[t][None]            # (Bb,C1,S) * (1,C1,S)
        if t % 2 == 0:
            acc_a = term if acc_a is None else acc_a + term
        else:
            acc_b = term if acc_b is None else acc_b + term
    acc = acc_a if acc_b is None else acc_a + acc_b
    acc = acc + wdm_ref[n_taps][None]           # folded BN1 shift (per-lane bias)

    # ---- PReLU + 1x1 conv C1 -> C0 (BN2 folded into the weights/bias) + residual ----
    z = jnp.where(acc > 0, acc, a2 * acc)
    o = z[:, 0:1, :] * w12[C0, :C0][None]
    for c1 in range(1, C1):
        o = o + z[:, c1:c1 + 1, :] * w12[C0 + c1, :C0][None]
    o = o + w12[C0 + C1, :C0][None]             # folded BN2 shift through w2
    out_ref[...] = (o + x).astype(out_ref.dtype)


def dilated_block(x_nchw, p, *, batch_block=None):
    """Wrapper: NCHW in / NCHW out, like the PyTorch module (no transposes)."""
    B, C0, H, W = x_nchw.shape
    C1 = p["w1"].shape[1]
    KH, KW = KERNEL_SIZE
    PH, PW = PADDING
    DH, DW = DILATION
    assert STRIDE == (1, 1)
    # residual add requires output spatial == input spatial after the crop
    assert 2 * PH == DH * (KH - 1)
    assert PW == DW * (KW - 1)
    S = H * W
    T = KH * KW

    if batch_block is None:
        batch_block = _pick_batch_block(B, _num_tensorcores())
    assert B % batch_block == 0
    grid = (B // batch_block,)

    x_flat = x_nchw.reshape(B, C0, S)           # free reshape of NCHW

    bn1s = p["bn1_scale"].reshape(C1)
    bn1b = p["bn1_shift"].reshape(C1)
    bn2s = p["bn2_scale"].reshape(C1)
    bn2b = p["bn2_shift"].reshape(C1)

    # Per-tap lane shift + validity mask on the flat (H*W) axis.  Output (h,w)
    # reads y[h + kh*DH - PH, w + kw*DW - PW]; the crop invariant keeps the
    # W-offset <= 0, so each tap is one static roll of the flat axis with the
    # row-wrap / H-boundary lanes zeroed (== the conv's zero padding).
    row = jnp.arange(S, dtype=jnp.int32) // W
    col = jnp.arange(S, dtype=jnp.int32) % W
    masks, shifts = [], []
    for ikh in range(KH):
        for ikw in range(KW):
            h_off = ikh * DH - PH
            w_off = ikw * DW - PW               # <= 0 by the crop invariant
            shifts.append((-(h_off * W + w_off)) % S)
            valid = (row + h_off >= 0) & (row + h_off < H) & (col + w_off >= 0)
            masks.append(valid)
    mask = jnp.stack(masks, axis=0).astype(jnp.float32)               # (T, S)

    # Fold BN1 into the depthwise conv (exact): scale -> tap weights,
    # shift -> per-channel per-lane bias (padding contributes zeros, which the
    # mask already encodes).
    wd_flat = p["wd"].reshape(C1, T).T                                # (T, C1)
    wdm = (bn1s[None, :] * wd_flat)[:, :, None] * mask[:, None, :]    # (T, C1, S)
    dbias = bn1b[:, None] * jnp.einsum("tc,ts->cs", wd_flat, mask)    # (C1, S)
    wdm_ext = jnp.concatenate([wdm, dbias[None]], axis=0)             # (T+1, C1, S)

    # Fold BN2 into the second 1x1 conv (exact), and pack w1 / w2' / bias'
    # into one small VMEM array (fewer tiny-input DMAs per step).
    w2f = bn2s[:, None] * p["w2"]                                     # (C1, C0)
    bias2 = jnp.einsum("c,cd->d", bn2b, p["w2"])                      # (C0,)
    Cm = max(C0, C1)
    pad_cols = lambda a: jnp.pad(a, ((0, 0), (0, Cm - a.shape[1])))
    w12 = jnp.concatenate(
        [pad_cols(p["w1"]), pad_cols(w2f), pad_cols(bias2[None, :])],
        axis=0).reshape(C0 + C1 + 1, Cm, 1)

    kern = functools.partial(dilated_block_kernel, shifts=tuple(shifts))

    out_flat = pl.pallas_call(
        kern,
        out_shape=jax.ShapeDtypeStruct((B, C0, S), x_nchw.dtype),
        grid_spec=pltpu.PrefetchScalarGridSpec(
            num_scalar_prefetch=0,
            grid=grid,
            in_specs=[
                pl.BlockSpec((1, 2), lambda b: (0, 0),
                             memory_space=pltpu.MemorySpace.SMEM),        # PReLU slopes
                pl.BlockSpec((batch_block, C0, S), lambda b: (b, 0, 0)),  # x (lane-dense)
                pl.BlockSpec((T + 1, C1, S), lambda b: (0, 0, 0)),        # masked taps + bias
                pl.BlockSpec((C0 + C1 + 1, Cm, 1), lambda b: (0, 0, 0)),  # packed 1x1 weights
            ],
            out_specs=pl.BlockSpec((batch_block, C0, S), lambda b: (b, 0, 0)),
        ),
        compiler_params=pltpu.CompilerParams(
            dimension_semantics=("parallel",),
            vmem_limit_bytes=32 * 1024 * 1024),
    )(p["alpha"], x_flat, wdm_ext, w12)

    return out_flat.reshape(B, C0, H, W)        # free reshape back to NCHW


def dilated_block_reference(x_nchw, p):
    """Pure-JAX reference (same semantics as the PyTorch forward, eval-BN)."""
    C1 = p["w1"].shape[1]
    a1 = p["alpha"][0, 0]
    a2 = p["alpha"][0, 1]
    y = jnp.einsum("bchw,cd->bdhw", x_nchw, p["w1"])
    y = jnp.where(y > 0, y, a1 * y)
    y = y * p["bn1_scale"][0][None, :, None, None] \
        + p["bn1_shift"][0][None, :, None, None]
    wd_oihw = p["wd"][:, None, :, :]            # (C1,1,KH,KW)
    y = lax.conv_general_dilated(
        y, wd_oihw, window_strides=STRIDE,
        padding=((PADDING[0], PADDING[0]), (PADDING[1], PADDING[1])),
        rhs_dilation=DILATION, feature_group_count=C1,
        dimension_numbers=("NCHW", "OIHW", "NCHW"))
    y = jnp.where(y > 0, y, a2 * y)
    y = y * p["bn2_scale"][0][None, :, None, None] \
        + p["bn2_shift"][0][None, :, None, None]
    y = jnp.einsum("bchw,cd->bdhw", y, p["w2"])
    return y[:, :, :, :-PADDING[1]] + x_nchw


def init_params(key):
    C0, C1 = NUM_CHANNELS
    KH, KW = KERNEL_SIZE
    k1, k2, k3, k4, k5 = jax.random.split(key, 5)
    w1 = jax.random.normal(k1, (C0, C1), jnp.float32) * 0.2      # 1x1 conv #1
    wd = jax.random.normal(k2, (C1, KH, KW), jnp.float32) * 0.2  # depthwise conv
    w2 = jax.random.normal(k3, (C1, C0), jnp.float32) * 0.2      # 1x1 conv #2
    # Two PReLU modules, each one learnable slope (PyTorch default
    # num_parameters=1); distinct values so the self-test exercises both.
    alpha = jnp.array([[0.25, 0.1]], jnp.float32)
    # Eval-mode BatchNorm2d folded to per-channel scale/shift; non-trivial
    # gamma/beta/stats so the in-wrapper BN folds are actually exercised.
    def bn(kg):
        kg1, kg2, kg3, kg4 = jax.random.split(kg, 4)
        gamma = 1.0 + 0.1 * jax.random.normal(kg1, (C1,), jnp.float32)
        beta = 0.1 * jax.random.normal(kg2, (C1,), jnp.float32)
        mean = 0.1 * jax.random.normal(kg3, (C1,), jnp.float32)
        var = jax.random.uniform(kg4, (C1,), jnp.float32, 0.5, 1.5)
        scale = gamma / jnp.sqrt(var + BN_EPS)
        shift = beta - mean * scale
        return scale[None, :], shift[None, :]
    bn1_scale, bn1_shift = bn(k4)
    bn2_scale, bn2_shift = bn(k5)
    return dict(w1=w1, wd=wd, w2=w2, alpha=alpha,
                bn1_scale=bn1_scale, bn1_shift=bn1_shift,
                bn2_scale=bn2_scale, bn2_shift=bn2_shift)


if __name__ == "__main__":
    key = jax.random.PRNGKey(0)
    kp, kx = jax.random.split(key)
    params = init_params(kp)
    x = jax.random.normal(kx, (2, NUM_CHANNELS[0], 16, 16), jnp.float32)  # NCHW

    out = jax.block_until_ready(dilated_block(x, params))
    ref = dilated_block_reference(x, params)

    assert out.shape == x.shape
    if not jnp.allclose(out, ref, atol=1e-3, rtol=1e-3):
        err = float(jnp.max(jnp.abs(out - ref)))
        raise SystemExit(f"mismatch vs reference (max abs err {err:.3e})")
    print("KERNEL_OK")
</pallas_src>

<mosaic_0001>
module attributes {stable_mosaic.version = 11 : i64} {
  func.func @dilated_block_kernel(%arg0: i32, %arg1: memref<1x2xf32, #tpu.memory_space<smem>>, %arg2: memref<2x4x256xf32, #tpu.memory_space<vmem>>, %arg3: memref<10x8x256xf32, #tpu.memory_space<vmem>>, %arg4: memref<13x8x1xf32, #tpu.memory_space<vmem>>, %arg5: memref<2x4x256xf32, #tpu.memory_space<vmem>>) attributes {dimension_semantics = [#tpu.dimension_semantics<parallel>], iteration_bounds = array<i64: 1>, scalar_prefetch = 0 : i64, scratch_operands = 0 : i64, tpu.core_type = #tpu.core_type<tc>, window_params = [{transform_indices = @transform_0, window_bounds = array<i64: 1, 2>}, {transform_indices = @transform_1, window_bounds = array<i64: 2, 4, 256>}, {pipeline_mode = #tpu.pipeline_mode<synchronous>, transform_indices = @transform_2, window_bounds = array<i64: 10, 8, 256>}, {pipeline_mode = #tpu.pipeline_mode<synchronous>, transform_indices = @transform_3, window_bounds = array<i64: 13, 8, 1>}, {transform_indices = @transform_4, window_bounds = array<i64: 2, 4, 256>}]} {
    %c0 = arith.constant 0 : index
    %c0_0 = arith.constant 0 : index
    %0 = memref.load %arg1[%c0, %c0_0] : memref<1x2xf32, #tpu.memory_space<smem>>
    %c0_1 = arith.constant 0 : index
    %c1 = arith.constant 1 : index
    %1 = memref.load %arg1[%c0_1, %c1] : memref<1x2xf32, #tpu.memory_space<smem>>
    %c0_2 = arith.constant 0 : index
    %c0_3 = arith.constant 0 : index
    %c0_4 = arith.constant 0 : index
    %2 = vector.load %arg2[%c0_2, %c0_3, %c0_4] : memref<2x4x256xf32, #tpu.memory_space<vmem>>, vector<2x4x256xf32>
    %c0_5 = arith.constant 0 : index
    %c0_6 = arith.constant 0 : index
    %c0_7 = arith.constant 0 : index
    %3 = vector.load %arg4[%c0_5, %c0_6, %c0_7] : memref<13x8x1xf32, #tpu.memory_space<vmem>>, vector<13x8x1xf32>
    %4 = vector.extract_strided_slice %2 {offsets = [0, 0, 0], sizes = [2, 1, 256], strides = [1, 1, 1]} : vector<2x4x256xf32> to vector<2x1x256xf32>
    %5 = vector.extract_strided_slice %3 {offsets = [0, 0, 0], sizes = [1, 8, 1], strides = [1, 1, 1]} : vector<13x8x1xf32> to vector<1x8x1xf32>
    %6 = vector.shape_cast %5 : vector<1x8x1xf32> to vector<8x1xf32>
    %7 = vector.shape_cast %6 : vector<8x1xf32> to vector<1x8x1xf32>
    %8 = vector.broadcast %4 : vector<2x1x256xf32> to vector<2x8x256xf32>
    %9 = vector.broadcast %7 : vector<1x8x1xf32> to vector<2x8x256xf32>
    %10 = arith.mulf %8, %9 : vector<2x8x256xf32>
    %11 = vector.extract_strided_slice %2 {offsets = [0, 1, 0], sizes = [2, 1, 256], strides = [1, 1, 1]} : vector<2x4x256xf32> to vector<2x1x256xf32>
    %12 = vector.extract_strided_slice %3 {offsets = [1, 0, 0], sizes = [1, 8, 1], strides = [1, 1, 1]} : vector<13x8x1xf32> to vector<1x8x1xf32>
    %13 = vector.shape_cast %12 : vector<1x8x1xf32> to vector<8x1xf32>
    %14 = vector.shape_cast %13 : vector<8x1xf32> to vector<1x8x1xf32>
    %15 = vector.broadcast %11 : vector<2x1x256xf32> to vector<2x8x256xf32>
    %16 = vector.broadcast %14 : vector<1x8x1xf32> to vector<2x8x256xf32>
    %17 = arith.mulf %15, %16 : vector<2x8x256xf32>
    %18 = arith.addf %10, %17 : vector<2x8x256xf32>
    %19 = vector.extract_strided_slice %2 {offsets = [0, 2, 0], sizes = [2, 1, 256], strides = [1, 1, 1]} : vector<2x4x256xf32> to vector<2x1x256xf32>
    %20 = vector.extract_strided_slice %3 {offsets = [2, 0, 0], sizes = [1, 8, 1], strides = [1, 1, 1]} : vector<13x8x1xf32> to vector<1x8x1xf32>
    %21 = vector.shape_cast %20 : vector<1x8x1xf32> to vector<8x1xf32>
    %22 = vector.shape_cast %21 : vector<8x1xf32> to vector<1x8x1xf32>
    %23 = vector.broadcast %19 : vector<2x1x256xf32> to vector<2x8x256xf32>
    %24 = vector.broadcast %22 : vector<1x8x1xf32> to vector<2x8x256xf32>
    %25 = arith.mulf %23, %24 : vector<2x8x256xf32>
    %26 = arith.addf %18, %25 : vector<2x8x256xf32>
    %27 = vector.extract_strided_slice %2 {offsets = [0, 3, 0], sizes = [2, 1, 256], strides = [1, 1, 1]} : vector<2x4x256xf32> to vector<2x1x256xf32>
    %28 = vector.extract_strided_slice %3 {offsets = [3, 0, 0], sizes = [1, 8, 1], strides = [1, 1, 1]} : vector<13x8x1xf32> to vector<1x8x1xf32>
    %29 = vector.shape_cast %28 : vector<1x8x1xf32> to vector<8x1xf32>
    %30 = vector.shape_cast %29 : vector<8x1xf32> to vector<1x8x1xf32>
    %31 = vector.broadcast %27 : vector<2x1x256xf32> to vector<2x8x256xf32>
    %32 = vector.broadcast %30 : vector<1x8x1xf32> to vector<2x8x256xf32>
    %33 = arith.mulf %31, %32 : vector<2x8x256xf32>
    %34 = arith.addf %26, %33 : vector<2x8x256xf32>
    %cst = arith.constant 0.000000e+00 : f32
    %35 = vector.broadcast %cst : f32 to vector<2x8x256xf32>
    %36 = arith.cmpf ogt, %34, %35 : vector<2x8x256xf32>
    %37 = vector.broadcast %0 : f32 to vector<2x8x256xf32>
    %38 = arith.mulf %37, %34 : vector<2x8x256xf32>
    %39 = arith.select %36, %34, %38 : vector<2x8x256xi1>, vector<2x8x256xf32>
    %c20_i32 = arith.constant 20 : i32
    %40 = tpu.dynamic_rotate %39 by %c20_i32 dim 2 : vector<2x8x256xf32>, i32 -> vector<2x8x256xf32>
    %c0_8 = arith.constant 0 : index
    %c0_9 = arith.constant 0 : index
    %c0_10 = arith.constant 0 : index
    %41 = vector.load %arg3[%c0_8, %c0_9, %c0_10] : memref<10x8x256xf32, #tpu.memory_space<vmem>>, vector<1x8x256xf32>
    %42 = vector.shape_cast %41 : vector<1x8x256xf32> to vector<8x256xf32>
    %43 = vector.shape_cast %42 : vector<8x256xf32> to vector<1x8x256xf32>
    %44 = vector.broadcast %43 : vector<1x8x256xf32> to vector<2x8x256xf32>
    %45 = arith.mulf %40, %44 : vector<2x8x256xf32>
    %c18_i32 = arith.constant 18 : i32
    %46 = tpu.dynamic_rotate %39 by %c18_i32 dim 2 : vector<2x8x256xf32>, i32 -> vector<2x8x256xf32>
    %c1_11 = arith.constant 1 : index
    %c0_12 = arith.constant 0 : index
    %c0_13 = arith.constant 0 : index
    %47 = vector.load %arg3[%c1_11, %c0_12, %c0_13] : memref<10x8x256xf32, #tpu.memory_space<vmem>>, vector<1x8x256xf32>
    %48 = vector.shape_cast %47 : vector<1x8x256xf32> to vector<8x256xf32>
    %49 = vector.shape_cast %48 : vector<8x256xf32> to vector<1x8x256xf32>
    %50 = vector.broadcast %49 : vector<1x8x256xf32> to vector<2x8x256xf32>
    %51 = arith.mulf %46, %50 : vector<2x8x256xf32>
    %c16_i32 = arith.constant 16 : i32
    %52 = tpu.dynamic_rotate %39 by %c16_i32 dim 2 : vector<2x8x256xf32>, i32 -> vector<2x8x256xf32>
    %c2 = arith.constant 2 : index
    %c0_14 = arith.constant 0 : index
    %c0_15 = arith.constant 0 : index
    %53 = vector.load %arg3[%c2, %c0_14, %c0_15] : memref<10x8x256xf32, #tpu.memory_space<vmem>>, vector<1x8x256xf32>
    %54 = vector.shape_cast %53 : vector<1x8x256xf32> to vector<8x256xf32>
    %55 = vector.shape_cast %54 : vector<8x256xf32> to vector<1x8x256xf32>
    %56 = vector.broadcast %55 : vector<1x8x256xf32> to vector<2x8x256xf32>
    %57 = arith.mulf %52, %56 : vector<2x8x256xf32>
    %58 = arith.addf %45, %57 : vector<2x8x256xf32>
    %c4_i32 = arith.constant 4 : i32
    %59 = tpu.dynamic_rotate %39 by %c4_i32 dim 2 : vector<2x8x256xf32>, i32 -> vector<2x8x256xf32>
    %c3 = arith.constant 3 : index
    %c0_16 = arith.constant 0 : index
    %c0_17 = arith.constant 0 : index
    %60 = vector.load %arg3[%c3, %c0_16, %c0_17] : memref<10x8x256xf32, #tpu.memory_space<vmem>>, vector<1x8x256xf32>
    %61 = vector.shape_cast %60 : vector<1x8x256xf32> to vector<8x256xf32>
    %62 = vector.shape_cast %61 : vector<8x256xf32> to vector<1x8x256xf32>
    %63 = vector.broadcast %62 : vector<1x8x256xf32> to vector<2x8x256xf32>
    %64 = arith.mulf %59, %63 : vector<2x8x256xf32>
    %65 = arith.addf %51, %64 : vector<2x8x256xf32>
    %c2_i32 = arith.constant 2 : i32
    %66 = tpu.dynamic_rotate %39 by %c2_i32 dim 2 : vector<2x8x256xf32>, i32 -> vector<2x8x256xf32>
    %c4 = arith.constant 4 : index
    %c0_18 = arith.constant 0 : index
    %c0_19 = arith.constant 0 : index
    %67 = vector.load %arg3[%c4, %c0_18, %c0_19] : memref<10x8x256xf32, #tpu.memory_space<vmem>>, vector<1x8x256xf32>
    %68 = vector.shape_cast %67 : vector<1x8x256xf32> to vector<8x256xf32>
    %69 = vector.shape_cast %68 : vector<8x256xf32> to vector<1x8x256xf32>
    %70 = vector.broadcast %69 : vector<1x8x256xf32> to vector<2x8x256xf32>
    %71 = arith.mulf %66, %70 : vector<2x8x256xf32>
    %72 = arith.addf %58, %71 : vector<2x8x256xf32>
    %c5 = arith.constant 5 : index
    %c0_20 = arith.constant 0 : index
    %c0_21 = arith.constant 0 : index
    %73 = vector.load %arg3[%c5, %c0_20, %c0_21] : memref<10x8x256xf32, #tpu.memory_space<vmem>>, vector<1x8x256xf32>
    %74 = vector.shape_cast %73 : vector<1x8x256xf32> to vector<8x256xf32>
    %75 = vector.shape_cast %74 : vector<8x256xf32> to vector<1x8x256xf32>
    %76 = vector.broadcast %75 : vector<1x8x256xf32> to vector<2x8x256xf32>
    %77 = arith.mulf %39, %76 : vector<2x8x256xf32>
    %78 = arith.addf %65, %77 : vector<2x8x256xf32>
    %c244_i32 = arith.constant 244 : i32
    %79 = tpu.dynamic_rotate %39 by %c244_i32 dim 2 : vector<2x8x256xf32>, i32 -> vector<2x8x256xf32>
    %c6 = arith.constant 6 : index
    %c0_22 = arith.constant 0 : index
    %c0_23 = arith.constant 0 : index
    %80 = vector.load %arg3[%c6, %c0_22, %c0_23] : memref<10x8x256xf32, #tpu.memory_space<vmem>>, vector<1x8x256xf32>
    %81 = vector.shape_cast %80 : vector<1x8x256xf32> to vector<8x256xf32>
    %82 = vector.shape_cast %81 : vector<8x256xf32> to vector<1x8x256xf32>
    %83 = vector.broadcast %82 : vector<1x8x256xf32> to vector<2x8x256xf32>
    %84 = arith.mulf %79, %83 : vector<2x8x256xf32>
    %85 = arith.addf %72, %84 : vector<2x8x256xf32>
    %c242_i32 = arith.constant 242 : i32
    %86 = tpu.dynamic_rotate %39 by %c242_i32 dim 2 : vector<2x8x256xf32>, i32 -> vector<2x8x256xf32>
    %c7 = arith.constant 7 : index
    %c0_24 = arith.constant 0 : index
    %c0_25 = arith.constant 0 : index
    %87 = vector.load %arg3[%c7, %c0_24, %c0_25] : memref<10x8x256xf32, #tpu.memory_space<vmem>>, vector<1x8x256xf32>
    %88 = vector.shape_cast %87 : vector<1x8x256xf32> to vector<8x256xf32>
    %89 = vector.shape_cast %88 : vector<8x256xf32> to vector<1x8x256xf32>
    %90 = vector.broadcast %89 : vector<1x8x256xf32> to vector<2x8x256xf32>
    %91 = arith.mulf %86, %90 : vector<2x8x256xf32>
    %92 = arith.addf %78, %91 : vector<2x8x256xf32>
    %c240_i32 = arith.constant 240 : i32
    %93 = tpu.dynamic_rotate %39 by %c240_i32 dim 2 : vector<2x8x256xf32>, i32 -> vector<2x8x256xf32>
    %c8 = arith.constant 8 : index
    %c0_26 = arith.constant 0 : index
    %c0_27 = arith.constant 0 : index
    %94 = vector.load %arg3[%c8, %c0_26, %c0_27] : memref<10x8x256xf32, #tpu.memory_space<vmem>>, vector<1x8x256xf32>
    %95 = vector.shape_cast %94 : vector<1x8x256xf32> to vector<8x256xf32>
    %96 = vector.shape_cast %95 : vector<8x256xf32> to vector<1x8x256xf32>
    %97 = vector.broadcast %96 : vector<1x8x256xf32> to vector<2x8x256xf32>
    %98 = arith.mulf %93, %97 : vector<2x8x256xf32>
    %99 = arith.addf %85, %98 : vector<2x8x256xf32>
    %100 = arith.addf %99, %92 : vector<2x8x256xf32>
    %c9 = arith.constant 9 : index
    %c0_28 = arith.constant 0 : index
    %c0_29 = arith.constant 0 : index
    %101 = vector.load %arg3[%c9, %c0_28, %c0_29] : memref<10x8x256xf32, #tpu.memory_space<vmem>>, vector<1x8x256xf32>
    %102 = vector.shape_cast %101 : vector<1x8x256xf32> to vector<8x256xf32>
    %103 = vector.shape_cast %102 : vector<8x256xf32> to vector<1x8x256xf32>
    %104 = vector.broadcast %103 : vector<1x8x256xf32> to vector<2x8x256xf32>
    %105 = arith.addf %100, %104 : vector<2x8x256xf32>
    %cst_30 = arith.constant 0.000000e+00 : f32
    %106 = vector.broadcast %cst_30 : f32 to vector<2x8x256xf32>
    %107 = arith.cmpf ogt, %105, %106 : vector<2x8x256xf32>
    %108 = vector.broadcast %1 : f32 to vector<2x8x256xf32>
    %109 = arith.mulf %108, %105 : vector<2x8x256xf32>
    %110 = arith.select %107, %105, %109 : vector<2x8x256xi1>, vector<2x8x256xf32>
    %111 = vector.extract_strided_slice %110 {offsets = [0, 0, 0], sizes = [2, 1, 256], strides = [1, 1, 1]} : vector<2x8x256xf32> to vector<2x1x256xf32>
    %112 = vector.extract_strided_slice %3 {offsets = [4, 0, 0], sizes = [1, 4, 1], strides = [1, 1, 1]} : vector<13x8x1xf32> to vector<1x4x1xf32>
    %113 = vector.shape_cast %112 : vector<1x4x1xf32> to vector<4x1xf32>
    %114 = vector.shape_cast %113 : vector<4x1xf32> to vector<1x4x1xf32>
    %115 = vector.broadcast %111 : vector<2x1x256xf32> to vector<2x4x256xf32>
    %116 = vector.broadcast %114 : vector<1x4x1xf32> to vector<2x4x256xf32>
    %117 = arith.mulf %115, %116 : vector<2x4x256xf32>
    %118 = vector.extract_strided_slice %110 {offsets = [0, 1, 0], sizes = [2, 1, 256], strides = [1, 1, 1]} : vector<2x8x256xf32> to vector<2x1x256xf32>
    %119 = vector.extract_strided_slice %3 {offsets = [5, 0, 0], sizes = [1, 4, 1], strides = [1, 1, 1]} : vector<13x8x1xf32> to vector<1x4x1xf32>
    %120 = vector.shape_cast %119 : vector<1x4x1xf32> to vector<4x1xf32>
    %121 = vector.shape_cast %120 : vector<4x1xf32> to vector<1x4x1xf32>
    %122 = vector.broadcast %118 : vector<2x1x256xf32> to vector<2x4x256xf32>
    %123 = vector.broadcast %121 : vector<1x4x1xf32> to vector<2x4x256xf32>
    %124 = arith.mulf %122, %123 : vector<2x4x256xf32>
    %125 = arith.addf %117, %124 : vector<2x4x256xf32>
    %126 = vector.extract_strided_slice %110 {offsets = [0, 2, 0], sizes = [2, 1, 256], strides = [1, 1, 1]} : vector<2x8x256xf32> to vector<2x1x256xf32>
    %127 = vector.extract_strided_slice %3 {offsets = [6, 0, 0], sizes = [1, 4, 1], strides = [1, 1, 1]} : vector<13x8x1xf32> to vector<1x4x1xf32>
    %128 = vector.shape_cast %127 : vector<1x4x1xf32> to vector<4x1xf32>
    %129 = vector.shape_cast %128 : vector<4x1xf32> to vector<1x4x1xf32>
    %130 = vector.broadcast %126 : vector<2x1x256xf32> to vector<2x4x256xf32>
    %131 = vector.broadcast %129 : vector<1x4x1xf32> to vector<2x4x256xf32>
    %132 = arith.mulf %130, %131 : vector<2x4x256xf32>
    %133 = arith.addf %125, %132 : vector<2x4x256xf32>
    %134 = vector.extract_strided_slice %110 {offsets = [0, 3, 0], sizes = [2, 1, 256], strides = [1, 1, 1]} : vector<2x8x256xf32> to vector<2x1x256xf32>
    %135 = vector.extract_strided_slice %3 {offsets = [7, 0, 0], sizes = [1, 4, 1], strides = [1, 1, 1]} : vector<13x8x1xf32> to vector<1x4x1xf32>
    %136 = vector.shape_cast %135 : vector<1x4x1xf32> to vector<4x1xf32>
    %137 = vector.shape_cast %136 : vector<4x1xf32> to vector<1x4x1xf32>
    %138 = vector.broadcast %134 : vector<2x1x256xf32> to vector<2x4x256xf32>
    %139 = vector.broadcast %137 : vector<1x4x1xf32> to vector<2x4x256xf32>
    %140 = arith.mulf %138, %139 : vector<2x4x256xf32>
    %141 = arith.addf %133, %140 : vector<2x4x256xf32>
    %142 = vector.extract_strided_slice %110 {offsets = [0, 4, 0], sizes = [2, 1, 256], strides = [1, 1, 1]} : vector<2x8x256xf32> to vector<2x1x256xf32>
    %143 = vector.extract_strided_slice %3 {offsets = [8, 0, 0], sizes = [1, 4, 1], strides = [1, 1, 1]} : vector<13x8x1xf32> to vector<1x4x1xf32>
    %144 = vector.shape_cast %143 : vector<1x4x1xf32> to vector<4x1xf32>
    %145 = vector.shape_cast %144 : vector<4x1xf32> to vector<1x4x1xf32>
    %146 = vector.broadcast %142 : vector<2x1x256xf32> to vector<2x4x256xf32>
    %147 = vector.broadcast %145 : vector<1x4x1xf32> to vector<2x4x256xf32>
    %148 = arith.mulf %146, %147 : vector<2x4x256xf32>
    %149 = arith.addf %141, %148 : vector<2x4x256xf32>
    %150 = vector.extract_strided_slice %110 {offsets = [0, 5, 0], sizes = [2, 1, 256], strides = [1, 1, 1]} : vector<2x8x256xf32> to vector<2x1x256xf32>
    %151 = vector.extract_strided_slice %3 {offsets = [9, 0, 0], sizes = [1, 4, 1], strides = [1, 1, 1]} : vector<13x8x1xf32> to vector<1x4x1xf32>
    %152 = vector.shape_cast %151 : vector<1x4x1xf32> to vector<4x1xf32>
    %153 = vector.shape_cast %152 : vector<4x1xf32> to vector<1x4x1xf32>
    %154 = vector.broadcast %150 : vector<2x1x256xf32> to vector<2x4x256xf32>
    %155 = vector.broadcast %153 : vector<1x4x1xf32> to vector<2x4x256xf32>
    %156 = arith.mulf %154, %155 : vector<2x4x256xf32>
    %157 = arith.addf %149, %156 : vector<2x4x256xf32>
    %158 = vector.extract_strided_slice %110 {offsets = [0, 6, 0], sizes = [2, 1, 256], strides = [1, 1, 1]} : vector<2x8x256xf32> to vector<2x1x256xf32>
    %159 = vector.extract_strided_slice %3 {offsets = [10, 0, 0], sizes = [1, 4, 1], strides = [1, 1, 1]} : vector<13x8x1xf32> to vector<1x4x1xf32>
    %160 = vector.shape_cast %159 : vector<1x4x1xf32> to vector<4x1xf32>
    %161 = vector.shape_cast %160 : vector<4x1xf32> to vector<1x4x1xf32>
    %162 = vector.broadcast %158 : vector<2x1x256xf32> to vector<2x4x256xf32>
    %163 = vector.broadcast %161 : vector<1x4x1xf32> to vector<2x4x256xf32>
    %164 = arith.mulf %162, %163 : vector<2x4x256xf32>
    %165 = arith.addf %157, %164 : vector<2x4x256xf32>
    %166 = vector.extract_strided_slice %110 {offsets = [0, 7, 0], sizes = [2, 1, 256], strides = [1, 1, 1]} : vector<2x8x256xf32> to vector<2x1x256xf32>
    %167 = vector.extract_strided_slice %3 {offsets = [11, 0, 0], sizes = [1, 4, 1], strides = [1, 1, 1]} : vector<13x8x1xf32> to vector<1x4x1xf32>
    %168 = vector.shape_cast %167 : vector<1x4x1xf32> to vector<4x1xf32>
    %169 = vector.shape_cast %168 : vector<4x1xf32> to vector<1x4x1xf32>
    %170 = vector.broadcast %166 : vector<2x1x256xf32> to vector<2x4x256xf32>
    %171 = vector.broadcast %169 : vector<1x4x1xf32> to vector<2x4x256xf32>
    %172 = arith.mulf %170, %171 : vector<2x4x256xf32>
    %173 = arith.addf %165, %172 : vector<2x4x256xf32>
    %174 = vector.extract_strided_slice %3 {offsets = [12, 0, 0], sizes = [1, 4, 1], strides = [1, 1, 1]} : vector<13x8x1xf32> to vector<1x4x1xf32>
    %175 = vector.shape_cast %174 : vector<1x4x1xf32> to vector<4x1xf32>
    %176 = vector.shape_cast %175 : vector<4x1xf32> to vector<1x4x1xf32>
    %177 = vector.broadcast %176 : vector<1x4x1xf32> to vector<2x4x256xf32>
    %178 = arith.addf %173, %177 : vector<2x4x256xf32>
    %179 = arith.addf %178, %2 : vector<2x4x256xf32>
    %c0_31 = arith.constant 0 : index
    %c0_32 = arith.constant 0 : index
    %c0_33 = arith.constant 0 : index
    %180 = vector.load %arg5[%c0_31, %c0_32, %c0_33] : memref<2x4x256xf32, #tpu.memory_space<vmem>>, vector<2x4x256xf32>
    tpu.vector_store %arg5[%c0_31, %c0_32, %c0_33], %179 {strides = array<i32>} : memref<2x4x256xf32, #tpu.memory_space<vmem>>, vector<2x4x256xf32>,
    return
  }
  func.func @transform_0(%arg0: i32) -> (i32, i32) {
    %c0_i32 = arith.constant 0 : i32
    %c0_i32_0 = arith.constant 0 : i32
    %c0_i32_1 = arith.constant 0 : i32
    return %c0_i32, %c0_i32_0 : i32, i32
  }
  func.func @transform_1(%arg0: i32) -> (i32, i32, i32) {
    %c0_i32 = arith.constant 0 : i32
    %c0_i32_0 = arith.constant 0 : i32
    %c0_i32_1 = arith.constant 0 : i32
    return %arg0, %c0_i32, %c0_i32_0 : i32, i32, i32
  }
  func.func @transform_2(%arg0: i32) -> (i32, i32, i32) {
    %c0_i32 = arith.constant 0 : i32
    %c0_i32_0 = arith.constant 0 : i32
    %c0_i32_1 = arith.constant 0 : i32
    %c0_i32_2 = arith.constant 0 : i32
    return %c0_i32, %c0_i32_0, %c0_i32_1 : i32, i32, i32
  }
  func.func @transform_3(%arg0: i32) -> (i32, i32, i32) {
    %c0_i32 = arith.constant 0 : i32
    %c0_i32_0 = arith.constant 0 : i32
    %c0_i32_1 = arith.constant 0 : i32
    %c0_i32_2 = arith.constant 0 : i32
    return %c0_i32, %c0_i32_0, %c0_i32_1 : i32, i32, i32
  }
  func.func @transform_4(%arg0: i32) -> (i32, i32, i32) {
    %c0_i32 = arith.constant 0 : i32
    %c0_i32_0 = arith.constant 0 : i32
    %c0_i32_1 = arith.constant 0 : i32
    return %arg0, %c0_i32, %c0_i32_0 : i32, i32, i32
  }
}

</mosaic_0001>

<bundles_post_ra>
// kernel: tpu_custom_call.1
= control target key start
LH: loop header
LB: loop body
LE: loop exit
PB: predicated region body
PF: predicated region fallthrough
CT: control target
= control target key end

     0   :  { %9 = vsyncpa [#allocation5], 0  ;;  %s1236_s0 = inlined_call_operand.vmem [shape: f32[1,2], index: 0, kind: input, shape index: {}]   ;;  %s1237_s1 = inlined_call_operand.vmem [shape: f32[2,4,256], index: 1, kind: input, shape index: {}]   ;;  %s1238_s2 = inlined_call_operand.hbm [shape: f32[10,8,256], index: 2, kind: input, shape index: {}]   ;;  %s1239_s3 = inlined_call_operand.vmem [shape: f32[13,8,1], index: 3, kind: input, shape index: {}]   ;;  %s1240_s4 = inlined_call_operand.hbm [shape: f32[2,4,256], index: 4, kind: output, shape index: {}]  }
   0x1   :  { %10 = vsyncpa [#allocation3], 0 }
   0x2   :  { %11 = vsyncpa [#allocation4], 0  ;;  %s18_s17 = sshll.u32 %s1236_s0, 4  ;;  %s19_s17 = int_to_ptr.vmem [resolvable:$true] %s18_s17 }
   0x3   :  { %s782_s18 = scalar_lea.vmem %s19_s17, 16  ;;  %p787_p1 = scmp.lt.s32.totalorder %s19_s17, %s19_s17 }
   0x4   :  { %p783_p0 = scmp.ne.s32.totalorder %s19_s17, %s782_s18  ;;  %p788_p2 = scmp.lt.s32.totalorder %s782_s18, %s782_s18 }
   0x6   :  { %p789_p3 = por %p788_p2, %p787_p1 }
   0x8   :  { %p790_p4 = pnand %p789_p3, %p783_p0 }
   0xa   :  { %793 = shalt.err (!%p790_p4)
}
   0xb   :  { %s840_s19 = smov [#allocation2]   ;;  %s841_s20 = smov [#allocation6]  }
   0xc   :  { %21 = dma.vmem_to_smem %s19_s17, 16, %s840_s19, [#allocation5]  }
   0xd   :  { %s29_s21 = sshll.u32 %s841_s20, 4  ;;  %s30_s21 = int_to_ptr.vmem [resolvable:$true] %s29_s21 }
   0xe   :  { %s802_s22 = scalar_lea.vmem %s30_s21, 2560  ;;  %p807_p6 = scmp.lt.s32.totalorder %s30_s21, %s30_s21 }
   0xf   :  { %p803_p5 = scmp.ne.s32.totalorder %s30_s21, %s802_s22  ;;  %p808_p7 = scmp.lt.s32.totalorder %s802_s22, %s802_s22 }
  0x11   :  { %p809_p8 = por %p808_p7, %p807_p6 }
  0x13   :  { %p810_p9 = pnand %p809_p8, %p803_p5 }
  0x15   :  { %813 = shalt.err (!%p810_p9)
}
  0x16   :  { %s842_s0 = smov 256   ;;  %s843_s23 = smov 16  }
  0x17   :  { %35 = dma.hbm_to_vmem [thread:$0]  %s1238_s2, 2560, %s30_s21, [#allocation3], %s842_s0, %s842_s0, %s843_s23  }
  0x18   :  { %834 = dma.done.wait [#allocation5], 16  }
  0x19   :  { %835 = vsyncadd [#allocation5], 4294967280 }
  0x1a   :  { %836 = dma.done.wait [#allocation3], 2560  }
  0x1b   :  { %837 = vsyncadd [#allocation3], 4294964736 }
  0x1c   :  { %44 = sfence }
  0x1d   :  { %v51_v0 = vld [vmem:[%s1239_s3 + $0x10] sm:$0xff]  ;;  %v49_v1 = vld [vmem:[%s1239_s3] sm:$0xff]  ;;  %v844_v2 = vmov 0   ;;  %v52_v3 = vld [vmem:[%s1239_s3 + $0x18] sm:$0xff]  ;;  %v64_v5 = vlaneseq  ;;  %s845_s11 = smov 20   ;;  %s846_s12 = smov 18  }
  0x1e   :  { %779 = vset.pattern.permute.xlu1 %v844_v2  ;;  %778 = vset.pattern.permute.xlu0 %v844_v2  ;;  %v50_v4 = vld [vmem:[%s1239_s3 + $0x8] sm:$0xff]  ;;  %v907_v9 = vld [vmem:[%s1237_s1] sm:$0xff]  ;;  %s847_s13 = smov 4   ;;  %s848_s14 = smov 2  }
  0x1f   :  { %196 = vperm.xlu1 %779, %v51_v0   ;;  %102 = vperm.xlu0 %778, %v49_v1   ;;  %v65_v6 = vshrl.u32 %v64_v5, 7  ;;  %v912_v10 = vld [vmem:[%s1237_s1 + $0x8] sm:$0xff]  ;;  %s45_s1 = sld [smem:[#allocation2]]  ;;  %s849_s15 = smov 116  }
  0x20   :  { %s850_s16 = smov 114   ;;  %s851_s17 = smov 112  }
  0x21   :  { %v900_v7 = vsub.s32 0, %v65_v6  ;;  %v902_v8 = vsub.s32 4, %v65_v6  ;;  %v914_v11 = vsub.s32 1, %v65_v6  ;;  %v916_v12 = vsub.s32 5, %v65_v6  ;;  %s852_s8 = smov [#allocation7]  }
  0x22   :  { %v918_v13 = vsub.s32 2, %v65_v6  ;;  %v920_v14 = vsub.s32 6, %v65_v6  ;;  %v922_v15 = vsub.s32 3, %v65_v6  ;;  %v924_v16 = vsub.s32 7, %v65_v6  ;;  %s749_s9 = sshll.u32 %s852_s8, 4  ;;  %s750_s9 = int_to_ptr.vmem [resolvable:$true] %s749_s9 }
  0x23   :  { %245 = vperm.xlu1 %779, %v52_v3   ;;  %147 = vperm.xlu0 %778, %v50_v4   ;;  %v67_v17 = vrot.slane %v907_v9, %v900_v7  ;;  %v71_v18 = vrot.slane %v907_v9, %v902_v8  ;;  %v75_v19 = vrot.slane %v912_v10, %v900_v7  ;;  %s814_s10 = scalar_lea.vmem %s750_s9, 256  ;;  %p819_p11 = scmp.lt.s32.totalorder %s750_s9, %s750_s9 }
  0x24   :  { %v79_v20 = vrot.slane %v912_v10, %v902_v8  ;;  %v112_v21 = vrot.slane %v907_v9, %v914_v11  ;;  %v116_v22 = vrot.slane %v907_v9, %v916_v12  ;;  %v120_v23 = vrot.slane %v912_v10, %v914_v11  ;;  %p815_p10 = scmp.ne.s32.totalorder %s750_s9, %s814_s10  ;;  %p820_p12 = scmp.lt.s32.totalorder %s814_s10, %s814_s10 }
  0x25   :  { %v124_v24 = vrot.slane %v912_v10, %v916_v12  ;;  %v161_v25 = vrot.slane %v907_v9, %v918_v13  ;;  %v165_v26 = vrot.slane %v907_v9, %v920_v14  ;;  %v169_v27 = vrot.slane %v912_v10, %v918_v13 }
  0x26   :  { %v173_v28 = vrot.slane %v912_v10, %v920_v14  ;;  %v210_v31 = vrot.slane %v907_v9, %v922_v15  ;;  %v214_v32 = vrot.slane %v907_v9, %v924_v16  ;;  %v218_v33 = vrot.slane %v912_v10, %v922_v15  ;;  %p821_p13 = por %p820_p12, %p819_p11 }
  0x27   :  { %v222_v34 = vrot.slane %v912_v10, %v924_v16  ;;  %v87_v35 = vrot.slane %v67_v17, %v900_v7  ;;  %v91_v36 = vrot.slane %v71_v18, %v900_v7  ;;  %v95_v37 = vrot.slane %v75_v19, %v900_v7 }
  0x28   :  { %v99_v38 = vrot.slane %v79_v20, %v900_v7  ;;  %v132_v39 = vrot.slane %v112_v21, %v914_v11  ;;  %v136_v40 = vrot.slane %v116_v22, %v914_v11  ;;  %v140_v41 = vrot.slane %v120_v23, %v914_v11  ;;  %p822_p0 = pnand %p821_p13, %p815_p10 }
  0x29   :  { %v144_v42 = vrot.slane %v124_v24, %v914_v11  ;;  %v181_v43 = vrot.slane %v161_v25, %v918_v13  ;;  %v185_v44 = vrot.slane %v165_v26, %v918_v13  ;;  %v189_v45 = vrot.slane %v169_v27, %v918_v13 }
  0x2a   :  { %v193_v46 = vrot.slane %v173_v28, %v918_v13  ;;  %v230_v47 = vrot.slane %v210_v31, %v922_v15  ;;  %v234_v48 = vrot.slane %v214_v32, %v922_v15  ;;  %v238_v49 = vrot.slane %v218_v33, %v922_v15 }
  0x2b   :  { %v242_v50 = vrot.slane %v222_v34, %v922_v15  ;;  %v260_v26 = vstv %s45_s1 }
  0x9a   :  { %v197_v29 = vpop.permute.xlu1 %196  ;;  %v103_v30 = vpop.permute.xlu0 %102 }
  0x9b   :  { %v105_v52 = vmul.f32 %v103_v30, %v87_v35  ;;  %v106_v53 = vmul.f32 %v103_v30, %v91_v36  ;;  %v107_v54 = vmul.f32 %v103_v30, %v95_v37  ;;  %v108_v55 = vmul.f32 %v103_v30, %v99_v38  ;;  %v54_v37 = vld [vmem:[%s1239_s3 + $0x28] sm:$0xff]  ;;  %v53_v38 = vld [vmem:[%s1239_s3 + $0x20] sm:$0xff] }
  0x9c   :  { %v199_v61 = vmul.f32 %v197_v29, %v181_v43  ;;  %v200_v62 = vmul.f32 %v197_v29, %v185_v44  ;;  %v201_v63 = vmul.f32 %v197_v29, %v189_v45  ;;  %v202_v0 = vmul.f32 %v197_v29, %v193_v46  ;;  %v60_v43 = vld [vmem:[%s1239_s3 + $0x58] sm:$0xff]  ;;  %v59_v44 = vld [vmem:[%s1239_s3 + $0x50] sm:$0xff]  ;;  %v61_v45 = vld [vmem:[%s1239_s3 + $0x60] sm:$0xff] }
  0x9e   :  { %v148_v51 = vpop.permute.xlu0 %147  ;;  %v246_v56 = vpop.permute.xlu1 %245 }
  0x9f   :  { %v150_v57 = vmul.f32 %v148_v51, %v132_v39  ;;  %v151_v58 = vmul.f32 %v148_v51, %v136_v40  ;;  %v152_v59 = vmul.f32 %v148_v51, %v140_v41  ;;  %v153_v60 = vmul.f32 %v148_v51, %v144_v42  ;;  %v56_v39 = vld [vmem:[%s1239_s3 + $0x38] sm:$0xff]  ;;  %v55_v40 = vld [vmem:[%s1239_s3 + $0x30] sm:$0xff]  ;;  %v58_v41 = vld [vmem:[%s1239_s3 + $0x48] sm:$0xff] }
  0xa0   :  { %v248_v6 = vmul.f32 %v246_v56, %v230_v47  ;;  %v250_v17 = vmul.f32 %v246_v56, %v238_v49  ;;  %v249_v22 = vmul.f32 %v246_v56, %v234_v48  ;;  %v251_v23 = vmul.f32 %v246_v56, %v242_v50  ;;  %v57_v42 = vld [vmem:[%s1239_s3 + $0x40] sm:$0xff]  ;;  %s1144_s3 = sld [smem:[#allocation2 + $0x1]] }
  0xa1   :  { %v154_v1 = vadd.f32 %v150_v57, %v105_v52  ;;  %v155_v2 = vadd.f32 %v151_v58, %v106_v53  ;;  %v156_v3 = vadd.f32 %v152_v59, %v107_v54  ;;  %v157_v4 = vadd.f32 %v153_v60, %v108_v55 }
  0xa3   :  { %v203_v18 = vadd.f32 %v199_v61, %v154_v1  ;;  %v204_v19 = vadd.f32 %v200_v62, %v155_v2  ;;  %v205_v20 = vadd.f32 %v201_v63, %v156_v3  ;;  %v206_v21 = vadd.f32 %v202_v0, %v157_v4  ;;  %v383_v3 = vld [vmem:[#allocation6 + $0x50] sm:$0xff]  ;;  %v384_v4 = vld [vmem:[#allocation6 + $0x58] sm:$0xff] }
  0xa4   :  { %v1050_v0 = vand.u32 127, %v64_v5 }
  0xa5   :  { %v252_v24 = vadd.f32 %v248_v6, %v203_v18  ;;  %v254_v25 = vadd.f32 %v250_v17, %v205_v20  ;;  %v253_v27 = vadd.f32 %v249_v22, %v204_v19  ;;  %v255_v28 = vadd.f32 %v251_v23, %v206_v21  ;;  %v324_v21 = vld [vmem:[#allocation6 + $0x20] sm:$0xff]  ;;  %v325_v22 = vld [vmem:[#allocation6 + $0x28] sm:$0xff] }
  0xa6   :  { %vm318_vm4 = vcmp.lt.s32.totalorder %v1050_v0, 16  ;;  %vm279_vm5 = vcmp.lt.s32.totalorder %v1050_v0, 20  ;;  %vm298_vm6 = vcmp.lt.s32.totalorder %v1050_v0, 18  ;;  %vm342_vm7 = vcmp.lt.s32.totalorder %v1050_v0, 4 }
  0xa7   :  { %vm256_vm0 = vcmp.gt.f32.partialorder %v252_v24, 0.0  ;;  %vm258_vm1 = vcmp.gt.f32.partialorder %v254_v25, 0.0  ;;  %v261_v29 = vmul.f32 %v260_v26, %v252_v24  ;;  %v263_v30 = vmul.f32 %v260_v26, %v254_v25 }
  0xa8   :  { %v262_v31 = vmul.f32 %v260_v26, %v253_v27  ;;  %v264_v32 = vmul.f32 %v260_v26, %v255_v28  ;;  %vm257_vm2 = vcmp.gt.f32.partialorder %v253_v27, 0.0  ;;  %vm259_vm3 = vcmp.gt.f32.partialorder %v255_v28, 0.0 }
  0xa9   :  { %v974_v33 = vsel %vm256_vm0, %v252_v24, %v261_v29  ;;  %v976_v34 = vsel %vm258_vm1, %v254_v25, %v263_v30  ;;  %vm366_vm8 = vcmp.lt.s32.totalorder %v1050_v0, 2  ;;  %vm401_vm9 = vcmp.lt.s32.totalorder %v1050_v0, 116 }
  0xaa   :  { %271 = vrot.lane.b32.xlu1 %v976_v34, %s845_s11  ;;  %269 = vrot.lane.b32.xlu0 %v974_v33, %s845_s11  ;;  %v980_v35 = vsel %vm257_vm2, %v253_v27, %v262_v31  ;;  %v982_v36 = vsel %vm259_vm3, %v255_v28, %v264_v32  ;;  %v1066_v5 = vmul.f32 %v383_v3, %v976_v34  ;;  %v284_v27 = vld [vmem:[#allocation6] sm:$0xff]  ;;  %v285_v28 = vld [vmem:[#allocation6 + $0x8] sm:$0xff]  ;;  %vm425_vm10 = vcmp.lt.s32.totalorder %v1050_v0, 114 }
  0xab   :  { %v1063_v18 = vmul.f32 %v384_v4, %v982_v36  ;;  %v1069_v19 = vmul.f32 %v384_v4, %v980_v35  ;;  %v1072_v20 = vmul.f32 %v383_v3, %v974_v33  ;;  %vm449_vm11 = vcmp.lt.s32.totalorder %v1050_v0, 112 }
  0xae   :  { %275 = vrot.lane.b32.xlu1 %v982_v36, %s845_s11  ;;  %273 = vrot.lane.b32.xlu0 %v980_v35, %s845_s11 }
  0xb2   :  { %312 = vrot.lane.b32.xlu1 %v976_v34, %s843_s23  ;;  %310 = vrot.lane.b32.xlu0 %v974_v33, %s843_s23 }
  0xb6   :  { %316 = vrot.lane.b32.xlu1 %v982_v36, %s843_s23  ;;  %314 = vrot.lane.b32.xlu0 %v980_v35, %s843_s23 }
  0xba   :  { %292 = vrot.lane.b32.xlu1 %v976_v34, %s846_s12  ;;  %290 = vrot.lane.b32.xlu0 %v974_v33, %s846_s12 }
  0xbe   :  { %296 = vrot.lane.b32.xlu1 %v982_v36, %s846_s12  ;;  %294 = vrot.lane.b32.xlu0 %v980_v35, %s846_s12 }
  0xc2   :  { %336 = vrot.lane.b32.xlu1 %v976_v34, %s847_s13  ;;  %334 = vrot.lane.b32.xlu0 %v974_v33, %s847_s13 }
  0xc6   :  { %340 = vrot.lane.b32.xlu1 %v982_v36, %s847_s13  ;;  %338 = vrot.lane.b32.xlu0 %v980_v35, %s847_s13 }
  0xca   :  { %360 = vrot.lane.b32.xlu1 %v976_v34, %s848_s14  ;;  %358 = vrot.lane.b32.xlu0 %v974_v33, %s848_s14 }
  0xce   :  { %364 = vrot.lane.b32.xlu1 %v982_v36, %s848_s14  ;;  %362 = vrot.lane.b32.xlu0 %v980_v35, %s848_s14 }
  0xd2   :  { %395 = vrot.lane.b32.xlu1 %v976_v34, %s849_s15  ;;  %393 = vrot.lane.b32.xlu0 %v974_v33, %s849_s15 }
  0xd6   :  { %399 = vrot.lane.b32.xlu1 %v982_v36, %s849_s15  ;;  %397 = vrot.lane.b32.xlu0 %v980_v35, %s849_s15 }
  0xda   :  { %419 = vrot.lane.b32.xlu1 %v976_v34, %s850_s16  ;;  %417 = vrot.lane.b32.xlu0 %v974_v33, %s850_s16 }
  0xde   :  { %423 = vrot.lane.b32.xlu1 %v982_v36, %s850_s16  ;;  %421 = vrot.lane.b32.xlu0 %v980_v35, %s850_s16 }
  0xe2   :  { %443 = vrot.lane.b32.xlu1 %v976_v34, %s851_s17  ;;  %441 = vrot.lane.b32.xlu0 %v974_v33, %s851_s17 }
  0xe6   :  { %447 = vrot.lane.b32.xlu1 %v982_v36, %s851_s17  ;;  %445 = vrot.lane.b32.xlu0 %v980_v35, %s851_s17 }
  0xea   :  { %532 = vperm.xlu1 %779, %v54_v37   ;;  %507 = vperm.xlu0 %778, %v53_v38  }
  0xee   :  { %590 = vperm.xlu1 %779, %v56_v39   ;;  %561 = vperm.xlu0 %778, %v55_v40  }
  0xf2   :  { %648 = vperm.xlu1 %779, %v58_v41   ;;  %619 = vperm.xlu0 %778, %v57_v42  }
  0xf6   :  { %706 = vperm.xlu1 %779, %v60_v43   ;;  %677 = vperm.xlu0 %778, %v59_v44   ;;  %v348_v43 = vld [vmem:[#allocation6 + $0x30] sm:$0xff]  ;;  %v349_v44 = vld [vmem:[#allocation6 + $0x38] sm:$0xff] }
  0xfa   :  { %719 = vperm.xlu0 %778, %v61_v45  }
 0x11c   :  { %v272_v46 = vpop.permute.xlu1 %271  ;;  %v270_v47 = vpop.permute.xlu0 %269 }
 0x120   :  { %v276_v48 = vpop.permute.xlu1 %275  ;;  %v274_v49 = vpop.permute.xlu0 %273 }
 0x121   :  { %v281_v29 = vsel %vm279_vm5, %v272_v46, %v276_v48  ;;  %v283_v30 = vsel %vm279_vm5, %v276_v48, %v272_v46  ;;  %v280_v31 = vsel %vm279_vm5, %v270_v47, %v274_v49  ;;  %v282_v32 = vsel %vm279_vm5, %v274_v49, %v270_v47  ;;  %v304_v49 = vld [vmem:[#allocation6 + $0x10] sm:$0xff] }
 0x122   :  { %v288_v39 = vmul.f32 %v284_v27, %v283_v30  ;;  %v289_v40 = vmul.f32 %v285_v28, %v281_v29  ;;  %v286_v41 = vmul.f32 %v284_v27, %v282_v32  ;;  %v287_v42 = vmul.f32 %v285_v28, %v280_v31  ;;  %v373_v29 = vld [vmem:[#allocation6 + $0x48] sm:$0xff]  ;;  %v407_v32 = vld [vmem:[#allocation6 + $0x60] sm:$0xff] }
 0x124   :  { %v313_v50 = vpop.permute.xlu1 %312  ;;  %v311_v51 = vpop.permute.xlu0 %310 }
 0x128   :  { %v317_v52 = vpop.permute.xlu1 %316  ;;  %v315_v53 = vpop.permute.xlu0 %314 }
 0x129   :  { %v320_v23 = vsel %vm318_vm4, %v313_v50, %v317_v52  ;;  %v322_v24 = vsel %vm318_vm4, %v317_v52, %v313_v50  ;;  %v319_v25 = vsel %vm318_vm4, %v311_v51, %v315_v53  ;;  %v321_v26 = vsel %vm318_vm4, %v315_v53, %v311_v51  ;;  %v305_v50 = vld [vmem:[#allocation6 + $0x18] sm:$0xff] }
 0x12a   :  { %v328_v33 = vmul.f32 %v324_v21, %v322_v24  ;;  %v329_v34 = vmul.f32 %v325_v22, %v320_v23  ;;  %v326_v35 = vmul.f32 %v324_v21, %v321_v26  ;;  %v327_v36 = vmul.f32 %v325_v22, %v319_v25 }
 0x12c   :  { %v293_v54 = vpop.permute.xlu1 %292  ;;  %v291_v55 = vpop.permute.xlu0 %290  ;;  %v333_v3 = vadd.f32 %v329_v34, %v289_v40  ;;  %v330_v4 = vadd.f32 %v326_v35, %v286_v41  ;;  %v331_v21 = vadd.f32 %v327_v36, %v287_v42 }
 0x130   :  { %v297_v56 = vpop.permute.xlu1 %296  ;;  %v295_v57 = vpop.permute.xlu0 %294 }
 0x131   :  { %v300_v51 = vsel %vm298_vm6, %v293_v54, %v297_v56  ;;  %v302_v52 = vsel %vm298_vm6, %v297_v56, %v293_v54  ;;  %v299_v53 = vsel %vm298_vm6, %v291_v55, %v295_v57  ;;  %v372_v56 = vld [vmem:[#allocation6 + $0x40] sm:$0xff] }
 0x132   :  { %v308_v26 = vmul.f32 %v304_v49, %v302_v52  ;;  %v309_v27 = vmul.f32 %v305_v50, %v300_v51  ;;  %v307_v54 = vmul.f32 %v305_v50, %v299_v53 }
 0x134   :  { %v337_v58 = vpop.permute.xlu1 %336  ;;  %v335_v59 = vpop.permute.xlu0 %334 }
 0x138   :  { %v341_v60 = vpop.permute.xlu1 %340  ;;  %v339_v61 = vpop.permute.xlu0 %338 }
 0x139   :  { %v344_v45 = vsel %vm342_vm7, %v337_v58, %v341_v60  ;;  %v346_v46 = vsel %vm342_vm7, %v341_v60, %v337_v58  ;;  %v343_v47 = vsel %vm342_vm7, %v335_v59, %v339_v61  ;;  %v345_v48 = vsel %vm342_vm7, %v339_v61, %v335_v59 }
 0x13a   :  { %v301_v58 = vsel %vm298_vm6, %v295_v57, %v291_v55  ;;  %v332_v60 = vadd.f32 %v328_v33, %v288_v39  ;;  %v352_v61 = vmul.f32 %v348_v43, %v346_v46  ;;  %v353_v23 = vmul.f32 %v349_v44, %v344_v45  ;;  %v408_v33 = vld [vmem:[#allocation6 + $0x68] sm:$0xff] }
 0x13b   :  { %v350_v24 = vmul.f32 %v348_v43, %v345_v48  ;;  %v351_v25 = vmul.f32 %v349_v44, %v343_v47  ;;  %v306_v28 = vmul.f32 %v304_v49, %v301_v58  ;;  %v431_v48 = vld [vmem:[#allocation6 + $0x70] sm:$0xff]  ;;  %v432_v49 = vld [vmem:[#allocation6 + $0x78] sm:$0xff] }
 0x13c   :  { %v1045_v62 = vpop.permute.xlu1 %360  ;;  %v1047_v63 = vpop.permute.xlu0 %358  ;;  %v357_v39 = vadd.f32 %v353_v23, %v309_v27 }
 0x13d   :  { %v354_v40 = vadd.f32 %v350_v24, %v306_v28  ;;  %v355_v41 = vadd.f32 %v351_v25, %v307_v54 }
 0x13e   :  { %v392_v58 = vadd.f32 %v1063_v18, %v357_v39 }
 0x13f   :  { %v390_v23 = vadd.f32 %v1069_v19, %v355_v41  ;;  %v389_v24 = vadd.f32 %v1072_v20, %v354_v40  ;;  %v470_v41 = vld [vmem:[#allocation6 + $0x90] sm:$0xff] }
 0x140   :  { %v1052_v1 = vpop.permute.xlu1 %364  ;;  %v1054_v2 = vpop.permute.xlu0 %362 }
 0x141   :  { %v368_v55 = vsel %vm366_vm8, %v1045_v62, %v1052_v1  ;;  %v370_v57 = vsel %vm366_vm8, %v1052_v1, %v1045_v62  ;;  %v367_v30 = vsel %vm366_vm8, %v1047_v63, %v1054_v2  ;;  %v369_v31 = vsel %vm366_vm8, %v1054_v2, %v1047_v63 }
 0x142   :  { %v356_v2 = vadd.f32 %v352_v61, %v308_v26  ;;  %v376_v42 = vmul.f32 %v372_v56, %v370_v57  ;;  %v377_v43 = vmul.f32 %v373_v29, %v368_v55  ;;  %v374_v44 = vmul.f32 %v372_v56, %v369_v31  ;;  %v456_v55 = vld [vmem:[#allocation6 + $0x88] sm:$0xff] }
 0x143   :  { %v375_v45 = vmul.f32 %v373_v29, %v367_v30 }
 0x144   :  { %v1058_v6 = vpop.permute.xlu1 %395  ;;  %v1060_v17 = vpop.permute.xlu0 %393  ;;  %v391_v61 = vadd.f32 %v1066_v5, %v356_v2  ;;  %v380_v25 = vadd.f32 %v376_v42, %v332_v60  ;;  %v381_v26 = vadd.f32 %v377_v43, %v333_v3  ;;  %v378_v27 = vadd.f32 %v374_v44, %v330_v4  ;;  %v471_v42 = vld [vmem:[#allocation6 + $0x98] sm:$0xff] }
 0x148   :  { %v400_v37 = vpop.permute.xlu1 %399  ;;  %v398_v38 = vpop.permute.xlu0 %397 }
 0x149   :  { %v403_v34 = vsel %vm401_vm9, %v1058_v6, %v400_v37  ;;  %v405_v62 = vsel %vm401_vm9, %v400_v37, %v1058_v6  ;;  %v402_v1 = vsel %vm401_vm9, %v1060_v17, %v398_v38  ;;  %v404_v35 = vsel %vm401_vm9, %v398_v38, %v1060_v17 }
 0x14a   :  { %v411_v46 = vmul.f32 %v407_v32, %v403_v34  ;;  %v412_v6 = vmul.f32 %v408_v33, %v405_v62  ;;  %v409_v37 = vmul.f32 %v407_v32, %v402_v1  ;;  %v410_v47 = vmul.f32 %v408_v33, %v404_v35 }
 0x14c   :  { %v420_v22 = vpop.permute.xlu1 %419  ;;  %v418_v59 = vpop.permute.xlu0 %417  ;;  %v415_v57 = vadd.f32 %v411_v46, %v380_v25  ;;  %v416_v18 = vadd.f32 %v412_v6, %v381_v26  ;;  %v413_v30 = vadd.f32 %v409_v37, %v378_v27  ;;  %v480_v46 = vstv %s1144_s3 }
 0x150   :  { %v424_v36 = vpop.permute.xlu1 %423  ;;  %v422_v63 = vpop.permute.xlu0 %421 }
 0x151   :  { %v427_v50 = vsel %vm425_vm10, %v420_v22, %v424_v36  ;;  %v429_v17 = vsel %vm425_vm10, %v424_v36, %v420_v22  ;;  %v426_v38 = vsel %vm425_vm10, %v418_v59, %v422_v63  ;;  %v428_v51 = vsel %vm425_vm10, %v422_v63, %v418_v59  ;;  %v455_v59 = vld [vmem:[#allocation6 + $0x80] sm:$0xff] }
 0x152   :  { %v379_v22 = vadd.f32 %v375_v45, %v331_v21  ;;  %v435_v28 = vmul.f32 %v431_v48, %v427_v50  ;;  %v436_v54 = vmul.f32 %v432_v49, %v429_v17  ;;  %v433_v56 = vmul.f32 %v431_v48, %v426_v38 }
 0x153   :  { %v434_v29 = vmul.f32 %v432_v49, %v428_v51 }
 0x154   :  { %v444_v52 = vpop.permute.xlu1 %443  ;;  %v442_v53 = vpop.permute.xlu0 %441  ;;  %v414_v5 = vadd.f32 %v410_v47, %v379_v22  ;;  %v439_v62 = vadd.f32 %v435_v28, %v391_v61  ;;  %v440_v1 = vadd.f32 %v436_v54, %v392_v58  ;;  %v437_v35 = vadd.f32 %v433_v56, %v389_v24 }
 0x155   :  { %v438_v36 = vadd.f32 %v434_v29, %v390_v23 }
 0x158   :  { %v448_v31 = vpop.permute.xlu1 %447  ;;  %v446_v19 = vpop.permute.xlu0 %445 }
 0x159   :  { %v451_v20 = vsel %vm449_vm11, %v444_v52, %v448_v31  ;;  %v453_v60 = vsel %vm449_vm11, %v448_v31, %v444_v52  ;;  %v450_v3 = vsel %vm449_vm11, %v442_v53, %v446_v19  ;;  %v452_v4 = vsel %vm449_vm11, %v446_v19, %v442_v53 }
 0x15a   :  { %v459_v21 = vmul.f32 %v455_v59, %v451_v20  ;;  %v460_v32 = vmul.f32 %v456_v55, %v453_v60  ;;  %v457_v33 = vmul.f32 %v455_v59, %v450_v3  ;;  %v458_v34 = vmul.f32 %v456_v55, %v452_v4 }
 0x15c   :  { %v463_v63 = vadd.f32 %v459_v21, %v415_v57  ;;  %v464_v2 = vadd.f32 %v460_v32, %v416_v18  ;;  %v461_v39 = vadd.f32 %v457_v33, %v413_v30  ;;  %v462_v40 = vadd.f32 %v458_v34, %v414_v5 }
 0x15e   :  { %v467_v43 = vadd.f32 %v463_v63, %v439_v62  ;;  %v468_v44 = vadd.f32 %v464_v2, %v440_v1  ;;  %v465_v45 = vadd.f32 %v461_v39, %v437_v35  ;;  %v466_v0 = vadd.f32 %v462_v40, %v438_v36 }
 0x160   :  { %v474_v6 = vadd.f32 %v470_v41, %v467_v43  ;;  %v475_v37 = vadd.f32 %v471_v42, %v468_v44  ;;  %v472_v47 = vadd.f32 %v470_v41, %v465_v45  ;;  %v473_v48 = vadd.f32 %v471_v42, %v466_v0 }
 0x162   :  { %vm478_vm12 = vcmp.gt.f32.partialorder %v474_v6, 0.0  ;;  %vm479_vm13 = vcmp.gt.f32.partialorder %v475_v37, 0.0  ;;  %v483_v49 = vmul.f32 %v480_v46, %v474_v6  ;;  %v484_v50 = vmul.f32 %v480_v46, %v475_v37 }
 0x163   :  { %vm476_vm14 = vcmp.gt.f32.partialorder %v472_v47, 0.0  ;;  %vm477_vm15 = vcmp.gt.f32.partialorder %v473_v48, 0.0  ;;  %v481_v17 = vmul.f32 %v480_v46, %v472_v47  ;;  %v482_v38 = vmul.f32 %v480_v46, %v473_v48 }
 0x164   :  { %v1155_v51 = vsel %vm478_vm12, %v474_v6, %v483_v49  ;;  %v1157_v52 = vsel %vm479_vm13, %v475_v37, %v484_v50 }
 0x165   :  { %v1159_v53 = vsel %vm476_vm14, %v472_v47, %v481_v17  ;;  %v1161_v58 = vsel %vm477_vm15, %v473_v48, %v482_v38  ;;  %v529_v61 = vrot.slane %v1157_v52, %v914_v11  ;;  %v533_v23 = vpop.permute.xlu1 %532  ;;  %v525_v24 = vrot.slane %v1155_v51, %v914_v11  ;;  %v508_v25 = vpop.permute.xlu0 %507 }
 0x166   :  { %v517_v26 = vrot.slane %v1159_v53, %v914_v11  ;;  %v521_v27 = vrot.slane %v1161_v58, %v914_v11  ;;  %v496_v22 = vrot.slane %v1161_v58, %v900_v7  ;;  %v500_v28 = vrot.slane %v1155_v51, %v900_v7 }
 0x167   :  { %v537_v54 = vmul.f32 %v533_v23, %v525_v24  ;;  %v504_v56 = vrot.slane %v1157_v52, %v900_v7  ;;  %v492_v29 = vrot.slane %v1159_v53, %v900_v7  ;;  %v538_v30 = vmul.f32 %v533_v23, %v529_v61 }
 0x168   :  { %v536_v59 = vmul.f32 %v533_v23, %v521_v27  ;;  %v511_v55 = vmul.f32 %v508_v25, %v496_v22  ;;  %v512_v57 = vmul.f32 %v508_v25, %v500_v28  ;;  %v535_v18 = vmul.f32 %v533_v23, %v517_v26 }
 0x169   :  { %v510_v5 = vmul.f32 %v508_v25, %v492_v29  ;;  %v513_v11 = vmul.f32 %v508_v25, %v504_v56  ;;  %v562_v31 = vpop.permute.xlu0 %561  ;;  %v587_v60 = vrot.slane %v1157_v52, %v922_v15  ;;  %v591_v3 = vpop.permute.xlu1 %590  ;;  %v575_v4 = vrot.slane %v1159_v53, %v922_v15 }
 0x16a   :  { %v540_v19 = vadd.f32 %v536_v59, %v511_v55  ;;  %v541_v20 = vadd.f32 %v537_v54, %v512_v57  ;;  %v579_v7 = vrot.slane %v1161_v58, %v922_v15  ;;  %v583_v21 = vrot.slane %v1155_v51, %v922_v15 }
 0x16b   :  { %v550_v32 = vrot.slane %v1161_v58, %v918_v13  ;;  %v554_v33 = vrot.slane %v1155_v51, %v918_v13  ;;  %v539_v34 = vadd.f32 %v535_v18, %v510_v5  ;;  %v542_v62 = vadd.f32 %v538_v30, %v513_v11 }
 0x16c   :  { %v558_v1 = vrot.slane %v1157_v52, %v918_v13  ;;  %v546_v35 = vrot.slane %v1159_v53, %v918_v13  ;;  %v593_v36 = vmul.f32 %v591_v3, %v575_v4  ;;  %v596_v63 = vmul.f32 %v591_v3, %v587_v60 }
 0x16d   :  { %v565_v2 = vmul.f32 %v562_v31, %v550_v32  ;;  %v566_v39 = vmul.f32 %v562_v31, %v554_v33  ;;  %v594_v40 = vmul.f32 %v591_v3, %v579_v7  ;;  %v595_v15 = vmul.f32 %v591_v3, %v583_v21  ;;  %v620_v46 = vpop.permute.xlu0 %619  ;;  %v649_v48 = vpop.permute.xlu1 %648 }
 0x16e   :  { %v564_v41 = vmul.f32 %v562_v31, %v546_v35  ;;  %v567_v42 = vmul.f32 %v562_v31, %v558_v1  ;;  %v645_v45 = vrot.slane %v1157_v52, %v916_v12  ;;  %v633_v0 = vrot.slane %v1159_v53, %v916_v12 }
 0x16f   :  { %v569_v43 = vadd.f32 %v565_v2, %v540_v19  ;;  %v570_v44 = vadd.f32 %v566_v39, %v541_v20  ;;  %v608_v13 = vrot.slane %v1161_v58, %v902_v8  ;;  %v612_v47 = vrot.slane %v1155_v51, %v902_v8 }
 0x170   :  { %v568_v6 = vadd.f32 %v564_v41, %v539_v34  ;;  %v571_v37 = vadd.f32 %v567_v42, %v542_v62  ;;  %v616_v17 = vrot.slane %v1157_v52, %v902_v8  ;;  %v604_v38 = vrot.slane %v1159_v53, %v902_v8 }
 0x171   :  { %v598_v49 = vadd.f32 %v594_v40, %v569_v43  ;;  %v599_v50 = vadd.f32 %v595_v15, %v570_v44  ;;  %v623_v24 = vmul.f32 %v620_v46, %v608_v13  ;;  %v624_v25 = vmul.f32 %v620_v46, %v612_v47  ;;  %v678_v30 = vpop.permute.xlu0 %677  ;;  %v707_v19 = vpop.permute.xlu1 %706 }
 0x172   :  { %v600_v61 = vadd.f32 %v596_v63, %v571_v37  ;;  %v597_v23 = vadd.f32 %v593_v36, %v568_v6  ;;  %v637_v26 = vrot.slane %v1161_v58, %v916_v12  ;;  %v641_v27 = vrot.slane %v1155_v51, %v916_v12 }
 0x173   :  { %v622_v22 = vmul.f32 %v620_v46, %v604_v38  ;;  %v625_v28 = vmul.f32 %v620_v46, %v616_v17  ;;  %v651_v54 = vmul.f32 %v649_v48, %v633_v0  ;;  %v654_v56 = vmul.f32 %v649_v48, %v645_v45 }
 0x174   :  { %v627_v29 = vadd.f32 %v623_v24, %v598_v49  ;;  %v628_v59 = vadd.f32 %v624_v25, %v599_v50  ;;  %v652_v55 = vmul.f32 %v649_v48, %v637_v26  ;;  %v653_v57 = vmul.f32 %v649_v48, %v641_v27 }
 0x175   :  { %v626_v18 = vadd.f32 %v622_v22, %v597_v23  ;;  %v629_v8 = vadd.f32 %v625_v28, %v600_v61  ;;  %v695_v5 = vrot.slane %v1161_v58, %v924_v16  ;;  %v699_v11 = vrot.slane %v1155_v51, %v924_v16 }
 0x176   :  { %v666_v12 = vrot.slane %v1161_v58, %v920_v14  ;;  %v670_v31 = vrot.slane %v1155_v51, %v920_v14  ;;  %v674_v20 = vrot.slane %v1157_v52, %v920_v14  ;;  %v662_v60 = vrot.slane %v1159_v53, %v920_v14 }
 0x177   :  { %v656_v3 = vadd.f32 %v652_v55, %v627_v29  ;;  %v657_v4 = vadd.f32 %v653_v57, %v628_v59  ;;  %v658_v32 = vadd.f32 %v654_v56, %v629_v8  ;;  %v655_v33 = vadd.f32 %v651_v54, %v626_v18 }
 0x178   :  { %v681_v7 = vmul.f32 %v678_v30, %v666_v12  ;;  %v682_v21 = vmul.f32 %v678_v30, %v670_v31  ;;  %v703_v34 = vrot.slane %v1157_v52, %v924_v16  ;;  %v691_v58 = vrot.slane %v1159_v53, %v924_v16  ;;  %v720_v16 = vpop.permute.xlu0 %719 }
 0x179   :  { %v680_v51 = vmul.f32 %v678_v30, %v662_v60  ;;  %v683_v62 = vmul.f32 %v678_v30, %v674_v20  ;;  %v710_v1 = vmul.f32 %v707_v19, %v695_v5  ;;  %v711_v35 = vmul.f32 %v707_v19, %v699_v11 }
 0x17a   :  { %v685_v36 = vadd.f32 %v681_v7, %v656_v3  ;;  %v686_v63 = vadd.f32 %v682_v21, %v657_v4  ;;  %v709_v2 = vmul.f32 %v707_v19, %v691_v58  ;;  %v712_v14 = vmul.f32 %v707_v19, %v703_v34 }
 0x17b   :  { %v687_v39 = vadd.f32 %v683_v62, %v658_v32  ;;  %v684_v40 = vadd.f32 %v680_v51, %v655_v33  ;;  %v726_v42 = vcombine.high %v907_v9, %v907_v9  ;;  %v727_v52 = vcombine.high %v912_v10, %v912_v10 }
 0x17c   :  { %v714_v15 = vadd.f32 %v710_v1, %v685_v36  ;;  %v715_v41 = vadd.f32 %v711_v35, %v686_v63 }
 0x17d   :  { %v716_v43 = vadd.f32 %v712_v14, %v687_v39  ;;  %v713_v53 = vadd.f32 %v709_v2, %v684_v40 }
 0x17e   :  { %v723_v44 = vadd.f32 %v720_v16, %v714_v15  ;;  %v724_v45 = vadd.f32 %v720_v16, %v715_v41 }
 0x17f   :  { %v722_v0 = vadd.f32 %v720_v16, %v713_v53  ;;  %v725_v46 = vadd.f32 %v720_v16, %v716_v43 }
 0x180   :  { %v731_v6 = vadd.f32 %v726_v42, %v723_v44  ;;  %v732_v37 = vadd.f32 %v724_v45, %v912_v10 }
 0x181   :  { %v730_v13 = vadd.f32 %v722_v0, %v907_v9  ;;  %v733_v47 = vadd.f32 %v727_v52, %v725_v46 }
 0x183   :  { %v738_v48 = vcombine.low %v730_v13, %v731_v6  ;;  %v739_v49 = vcombine.low %v732_v37, %v733_v47 }
 0x185   :  { %742 = vst [vmem:[#allocation7] sm:$0xff] %v738_v48  ;;  %743 = vst [vmem:[#allocation7 + $0x8] sm:$0xff] %v739_v49 }
 0x186   :  { %825 = shalt.err (!%p822_p0)
}
 0x187   :  { %s853_s1 = smov 128   ;;  %s854_s11 = smov 8  }
 0x188   :  { %755 = dma.vmem_to_hbm [thread:$0]  %s750_s9, 256, %s1240_s4, [#allocation4], %s853_s1, %s853_s1, %s854_s11  }
 0x189   :  { %838 = dma.done.wait [#allocation4], 256  }
 0x18a   :  { %839 = vsyncadd [#allocation4], 4294967040 }
 0x18b   :  { %759 = vsyncpa [#allocation3], 1 }
 0x18c   :  { %760 = vsyncpa [#allocation4], 1 }
 0x18d   :  { %761 = vsyncpa [#allocation5], 1 }

</bundles_post_ra>
